<compile_context>
chip_gen: v5e
topology: v5e:2x2
jax: 0.10.0
libtpu: 0.0.40
codegen_flags: <defaults>
</compile_context>

<pallas_src>
import jax
import jax.numpy as jnp
from jax.experimental import pallas as pl
from jax.experimental.pallas import tpu as pltpu

_LANES = 128
_SUBLANES = 8
_MAX_TM = 1024  # rows per tile: 1024*128*4 B = 512 KiB per f32 input buffer


def _make_kl_kernel(tm, n_total, needs_mask):
    """Build the per-tile kernel (tm, n_total, needs_mask are trace-time constants)."""
    rows_div8 = (tm % _SUBLANES) == 0

    def kernel(mean_ref, logvar_ref, out_ref):
        i = pl.program_id(0)

        m = mean_ref[...].astype(jnp.float32)
        lv = logvar_ref[...].astype(jnp.float32)
        # f = m^2 + std^2 - log(std^2)  with std = exp(lv/2)  ==>  m^2 + exp(lv) - lv
        f = m * m + jnp.exp(lv) - lv

        if needs_mask:
            # Zero elements past the true element count (partial last tile and/or
            # lane padding). jnp.where is a lane select, so OOB garbage (even NaN/Inf
            # after exp) never propagates.
            row = jax.lax.broadcasted_iota(jnp.int32, f.shape, 0) + i * tm
            lane = jax.lax.broadcasted_iota(jnp.int32, f.shape, 1)
            f = jnp.where(row * _LANES + lane < n_total, f, jnp.float32(0.0))

        if rows_div8:
            # VALU-only partial reduction: the reshape is tile-aligned (each (8,128)
            # slab is exactly one vreg), so this lowers to elementwise vreg adds with
            # no cross-sublane XLU op. Result is a full, unmasked (8,128) store.
            partial = jnp.sum(f.reshape(tm // _SUBLANES, _SUBLANES, _LANES), axis=0)
        else:
            # Only reachable when grid == 1 and rows < 8k: one XLU sublane reduce,
            # placed in sublane 0 of the (8, 128) output block.
            s = jnp.sum(f, axis=0, keepdims=True)  # (1, 128)
            sub = jax.lax.broadcasted_iota(jnp.int32, (_SUBLANES, _LANES), 0)
            partial = jnp.where(sub == 0, s, jnp.float32(0.0))

        out_ref[...] = partial

    return kernel


def custom_kl_loss(mean, logvar, average=True):
    assert mean.shape == logvar.shape
    n_total = mean.size              # N = total number of image voxels
    bs = mean.shape[0]

    flat_m = mean.reshape(-1)
    flat_lv = logvar.reshape(-1)

    # Only pad up to the next lane multiple (<= 127 elems) in the rare case the voxel
    # count is not a multiple of 128; otherwise the reshape below is free.
    lane_pad = (-n_total) % _LANES
    if lane_pad:
        flat_m = jnp.pad(flat_m, (0, lane_pad))
        flat_lv = jnp.pad(flat_lv, (0, lane_pad))

    rows = (n_total + lane_pad) // _LANES
    m2d = flat_m.reshape(rows, _LANES)
    lv2d = flat_lv.reshape(rows, _LANES)

    # Block row count: full array if small (always a legal block shape), else a big
    # 8-divisible tile.
    tm = rows if rows <= _MAX_TM else _MAX_TM
    grid_size = pl.cdiv(rows, tm)
    needs_mask = (lane_pad != 0) or (rows % tm != 0)

    kernel = _make_kl_kernel(tm, n_total, needs_mask)

    in_bytes = (mean.dtype.itemsize + logvar.dtype.itemsize) * n_total
    out_bytes = grid_size * _SUBLANES * _LANES * 4
    cost = pl.CostEstimate(
        flops=5 * n_total,
        transcendentals=n_total,
        bytes_accessed=in_bytes + out_bytes,
    )

    partials = pl.pallas_call(
        kernel,
        out_shape=jax.ShapeDtypeStruct((grid_size * _SUBLANES, _LANES), jnp.float32),
        grid_spec=pltpu.PrefetchScalarGridSpec(
            num_scalar_prefetch=0,
            grid=(grid_size,),
            in_specs=[
                pl.BlockSpec((tm, _LANES), lambda i: (i, 0)),
                pl.BlockSpec((tm, _LANES), lambda i: (i, 0)),
            ],
            out_specs=pl.BlockSpec((_SUBLANES, _LANES), lambda i: (i, 0)),
        ),
        compiler_params=pltpu.CompilerParams(
            # Each grid step writes its own output block -> axis is truly parallel
            # (v7x megacore shards it across both TensorCores).
            dimension_semantics=("parallel",),
        ),
        cost_estimate=cost,
    )(m2d, lv2d)

    total = jnp.sum(partials)  # tiny final reduction, once

    if average:
        # mean(a) + mean(b) - mean(c) - 1 == sum(a+b-c)/N - 1
        return total / jnp.float32(n_total) - 1.0
    else:
        # sum(a + b - c - 1) / bs == (sum(a+b-c) - N) / bs
        return (total - jnp.float32(n_total)) / jnp.float32(bs)


def _reference(mean, logvar, average=True):
    std = jnp.exp(logvar / 2)
    var = std * std
    if average:
        return (jnp.mean(mean * mean) + jnp.mean(var)
                - jnp.mean(jnp.log(var)) - 1)
    bs = mean.shape[0]
    return jnp.sum(mean * mean + var - jnp.log(var) - 1) / bs


if __name__ == "__main__":
    key = jax.random.PRNGKey(0)

    # Main check: small VAE-latent-like NCHW shape, lane-aligned (no masking path).
    k1, k2 = jax.random.split(key)
    mean = jax.random.normal(k1, (2, 4, 16, 16), dtype=jnp.float32)
    logvar = 0.5 * jax.random.normal(k2, (2, 4, 16, 16), dtype=jnp.float32)

    out = jax.block_until_ready(custom_kl_loss(mean, logvar, average=True))
    ref = _reference(mean, logvar, average=True)
    assert jnp.allclose(out, ref, rtol=1e-5, atol=1e-5), (out, ref)

    out2 = jax.block_until_ready(custom_kl_loss(mean, logvar, average=False))
    ref2 = _reference(mean, logvar, average=False)
    assert jnp.allclose(out2, ref2, rtol=1e-5, atol=1e-4), (out2, ref2)

    # Non-lane-aligned shape (exercises the lane pad + in-kernel mask + sub-8-row path).
    k3, k4 = jax.random.split(k1)
    mean_s = jax.random.normal(k3, (2, 3, 7, 5), dtype=jnp.float32)
    logvar_s = 0.3 * jax.random.normal(k4, (2, 3, 7, 5), dtype=jnp.float32)
    out3 = jax.block_until_ready(custom_kl_loss(mean_s, logvar_s, average=True))
    ref3 = _reference(mean_s, logvar_s, average=True)
    assert jnp.allclose(out3, ref3, rtol=1e-4, atol=1e-4), (out3, ref3)

    # Multi-tile grid with a partial last tile (exercises parallel per-block partials
    # + mask path).
    k5, k6 = jax.random.split(k2)
    mean_b = jax.random.normal(k5, (2, 8, 96, 96), dtype=jnp.float32)
    logvar_b = 0.5 * jax.random.normal(k6, (2, 8, 96, 96), dtype=jnp.float32)
    out4 = jax.block_until_ready(custom_kl_loss(mean_b, logvar_b, average=True))
    ref4 = _reference(mean_b, logvar_b, average=True)
    assert jnp.allclose(out4, ref4, rtol=1e-4, atol=1e-4), (out4, ref4)
    out5 = jax.block_until_ready(custom_kl_loss(mean_b, logvar_b, average=False))
    ref5 = _reference(mean_b, logvar_b, average=False)
    assert jnp.allclose(out5, ref5, rtol=1e-4, atol=1e-3), (out5, ref5)

    print("KERNEL_OK")
</pallas_src>

<mosaic_0001>
module attributes {stable_mosaic.version = 11 : i64} {
  func.func @kernel(%arg0: i32, %arg1: memref<16x128xf32, #tpu.memory_space<vmem>>, %arg2: memref<16x128xf32, #tpu.memory_space<vmem>>, %arg3: memref<8x128xf32, #tpu.memory_space<vmem>>) attributes {dimension_semantics = [#tpu.dimension_semantics<parallel>], iteration_bounds = array<i64: 1>, scalar_prefetch = 0 : i64, scratch_operands = 0 : i64, tpu.core_type = #tpu.core_type<tc>, window_params = [{transform_indices = @transform_0, window_bounds = array<i64: 16, 128>}, {transform_indices = @transform_1, window_bounds = array<i64: 16, 128>}, {transform_indices = @transform_2, window_bounds = array<i64: 8, 128>}]} {
    %c0 = arith.constant 0 : index
    %c0_0 = arith.constant 0 : index
    %0 = vector.load %arg1[%c0, %c0_0] : memref<16x128xf32, #tpu.memory_space<vmem>>, vector<16x128xf32>
    %c0_1 = arith.constant 0 : index
    %c0_2 = arith.constant 0 : index
    %1 = vector.load %arg2[%c0_1, %c0_2] : memref<16x128xf32, #tpu.memory_space<vmem>>, vector<16x128xf32>
    %2 = arith.mulf %0, %0 : vector<16x128xf32>
    %3 = math.exp %1 : vector<16x128xf32>
    %4 = arith.addf %2, %3 : vector<16x128xf32>
    %5 = arith.subf %4, %1 : vector<16x128xf32>
    %6 = vector.shape_cast %5 : vector<16x128xf32> to vector<2x8x128xf32>
    %cst = arith.constant dense<0.000000e+00> : vector<8x128xf32>
    %7 = vector.multi_reduction <add>, %6, %cst [0] : vector<2x8x128xf32> to vector<8x128xf32>
    %c0_3 = arith.constant 0 : index
    %c0_4 = arith.constant 0 : index
    %8 = vector.load %arg3[%c0_3, %c0_4] : memref<8x128xf32, #tpu.memory_space<vmem>>, vector<8x128xf32>
    tpu.vector_store %arg3[%c0_3, %c0_4], %7 {strides = array<i32>} : memref<8x128xf32, #tpu.memory_space<vmem>>, vector<8x128xf32>,
    return
  }
  func.func @transform_0(%arg0: i32) -> (i32, i32) {
    %c0_i32 = arith.constant 0 : i32
    %c0_i32_0 = arith.constant 0 : i32
    return %arg0, %c0_i32 : i32, i32
  }
  func.func @transform_1(%arg0: i32) -> (i32, i32) {
    %c0_i32 = arith.constant 0 : i32
    %c0_i32_0 = arith.constant 0 : i32
    return %arg0, %c0_i32 : i32, i32
  }
  func.func @transform_2(%arg0: i32) -> (i32, i32) {
    %c0_i32 = arith.constant 0 : i32
    %c0_i32_0 = arith.constant 0 : i32
    return %arg0, %c0_i32 : i32, i32
  }
}

</mosaic_0001>

<bundles_post_ra>
// kernel: tpu_custom_call.1
= control target key start
LH: loop header
LB: loop body
LE: loop exit
PB: predicated region body
PF: predicated region fallthrough
CT: control target
= control target key end

     0   :  { %7 = vsyncpa [#allocation3], 0  ;;  %s194_s0 = inlined_call_operand.hbm [shape: f32[16,128], index: 0, kind: input, shape index: {}]   ;;  %s195_s1 = inlined_call_operand.hbm [shape: f32[16,128], index: 1, kind: input, shape index: {}]   ;;  %s196_s2 = inlined_call_operand.hbm [shape: f32[8,128], index: 2, kind: output, shape index: {}]  }
   0x1   :  { %8 = vsyncpa [#allocation6], 0 }
   0x2   :  { %9 = vsyncpa [#allocation4], 0  ;;  %s14_s11 = sshll.u32 %s194_s0, 4  ;;  %s165_s12 = smov [#allocation2]   ;;  %s15_s11 = int_to_ptr.hbm [resolvable:$true] %s14_s11 }
   0x3   :  { %s16_s13 = sshll.u32 %s165_s12, 4  ;;  %s27_s16 = sshll.u32 %s195_s1, 4  ;;  %s17_s13 = int_to_ptr.vmem [resolvable:$true] %s16_s13  ;;  %s28_s16 = int_to_ptr.hbm [resolvable:$true] %s27_s16 }
   0x4   :  { %s166_s17 = smov 128   ;;  %s167_s18 = smov 8  }
   0x5   :  { %22 = dma.hbm_to_vmem [thread:$0]  %s15_s11, 256, %s17_s13, [#allocation3], %s166_s17, %s166_s17, %s167_s18  }
   0x6   :  { %s168_s19 = smov [#allocation5]  }
   0x7   :  { %s29_s20 = sshll.u32 %s168_s19, 4  ;;  %s30_s20 = int_to_ptr.vmem [resolvable:$true] %s29_s20 }
   0x8   :  { %35 = dma.hbm_to_vmem [thread:$0]  %s28_s16, 256, %s30_s20, [#allocation6], %s166_s17, %s166_s17, %s167_s18  }
   0x9   :  { %159 = dma.done.wait [#allocation3], 256  }
   0xa   :  { %160 = vsyncadd [#allocation3], 4294967040 }
   0xb   :  { %161 = dma.done.wait [#allocation6], 256  }
   0xc   :  { %162 = vsyncadd [#allocation6], 4294967040  ;;  %v46_v0 = vld [vmem:[#allocation5] sm:$0xff]  ;;  %v47_v1 = vld [vmem:[#allocation5 + $0x8] sm:$0xff]  ;;  %s169_s0 = smov [#allocation7]   ;;  %s67_s23 = sshll.u32 %s196_s2, 4  ;;  %s68_s23 = int_to_ptr.hbm [resolvable:$true] %s67_s23 }
   0xd   :  { %v50_v2 = vmul.f32 1.442695, %v46_v0  ;;  %v52_v3 = vmul.f32 1.442695, %v47_v1  ;;  %v44_v4 = vld [vmem:[#allocation2] sm:$0xff]  ;;  %v45_v5 = vld [vmem:[#allocation2 + $0x8] sm:$0xff] }
   0xe   :  { %v48_v6 = vmul.f32 %v44_v4, %v44_v4  ;;  %v49_v7 = vmul.f32 %v45_v5, %v45_v5  ;;  %s65_s1 = sshll.u32 %s169_s0, 4  ;;  %s66_s1 = int_to_ptr.vmem [resolvable:$true] %s65_s1 }
   0xf   :  { %83 = vpow2.f32 %v50_v2 }
  0x10   :  { %85 = vpow2.f32 %v52_v3 }
  0x15   :  { %v84_v8 = vpop.eup %83 }
  0x16   :  { %v86_v9 = vpop.eup %85  ;;  %v54_v10 = vadd.f32 %v84_v8, %v48_v6 }
  0x17   :  { %v55_v11 = vadd.f32 %v86_v9, %v49_v7 }
  0x18   :  { %v56_v12 = vsub.f32 %v54_v10, %v46_v0 }
  0x19   :  { %v57_v13 = vsub.f32 %v55_v11, %v47_v1 }
  0x1b   :  { %v58_v14 = vadd.f32 %v57_v13, %v56_v12 }
  0x1d   :  { %59 = vst [vmem:[#allocation7] sm:$0xff] %v58_v14 }
  0x1e   :  { %70 = dma.vmem_to_hbm [thread:$0]  %s66_s1, 128, %s68_s23, [#allocation4]  }
  0x1f   :  { %163 = dma.done.wait [#allocation4], 128  }
  0x20   :  { %164 = vsyncadd [#allocation4], 4294967168 }
  0x21   :  { %75 = vsyncpa [#allocation3], 1 }
  0x22   :  { %76 = vsyncpa [#allocation6], 1 }
  0x23   :  { %77 = vsyncpa [#allocation4], 1 }

</bundles_post_ra>
